<compile_context>
chip_gen: v7x
topology: tpu7x:2x2x1
jax: 0.10.0
libtpu: 0.0.40
codegen_flags: <defaults>
</compile_context>

<pallas_src>
import functools

import jax
import jax.numpy as jnp
from jax.experimental import pallas as pl
from jax.experimental.pallas import tpu as pltpu

SMOOTHING = 1e-5
LANES = 128


def _dice_kernel(yp_ref, yt_ref, out_ref, tp_acc, den_acc, *, num_classes):
    pid = pl.program_id(0)

    @pl.when(pid == 0)
    def _init():
        tp_acc[...] = jnp.zeros_like(tp_acc)
        den_acc[...] = jnp.zeros_like(den_acc)

    yp = yp_ref[...].astype(jnp.float32)
    yt = yt_ref[...].astype(jnp.float32)

    # Per-lane partial sums over this row tile (lane j <-> class j % C).
    tp_acc[...] += jnp.sum(yt * yp, axis=0, keepdims=True)
    den_acc[...] += jnp.sum(yp + yt, axis=0, keepdims=True)

    @pl.when(pid == pl.num_programs(0) - 1)
    def _finalize():
        tp = tp_acc[...]
        den = den_acc[...]
        # Fold the 128 // C interleaved class groups with circular lane rolls
        # (XLU slot, off the VPU critical path). After folding, lane c (c < C)
        # holds the full per-class total.
        shift = LANES // 2
        while shift >= num_classes:
            tp = tp + pltpu.roll(tp, shift, 1)
            den = den + pltpu.roll(den, shift, 1)
            shift //= 2
        # tp + 0.5*(fp + fn) == 0.5*(sum_pred + sum_true)
        f1 = (tp + SMOOTHING) / (0.5 * den + SMOOTHING)
        lane = jax.lax.broadcasted_iota(jnp.int32, (1, LANES), 1)
        valid = (lane >= 1) & (lane < num_classes)  # drop class 0
        mean11 = jnp.sum(jnp.where(valid, f1, 0.0), axis=1, keepdims=True)
        mean11 = mean11 * (1.0 / (num_classes - 1))
        out_ref[...] = -mean11  # (1, 1): negation folded into the kernel


def dice_loss_forward(y_pred, y_true, *, tile_rows=1024):
    """Pallas implementation of Dice_loss.forward; returns the scalar loss."""
    assert y_pred.shape == y_true.shape and y_pred.ndim == 2
    N, C = y_pred.shape
    assert C >= 2, "Dice_loss drops class 0; needs at least 2 classes"
    assert LANES % C == 0, "lane-dense layout needs the class dim to divide 128"
    # TODO(synk): support C that does not divide 128 (needs per-row class masking).

    total = N * C
    rows = pl.cdiv(total, LANES)
    tile = min(tile_rows, rows)          # (1024,128) f32 = 512 KiB/buffer -> fits v7x scoped VMEM
    steps = pl.cdiv(rows, tile)
    rows_p = steps * tile
    pad = rows_p * LANES - total

    yp = y_pred.reshape(-1)
    yt = y_true.reshape(-1)
    if pad:
        # Zero padding is sum-neutral for tp / sum_pred / sum_true.
        yp = jnp.pad(yp, (0, pad))
        yt = jnp.pad(yt, (0, pad))
    yp = yp.reshape(rows_p, LANES)
    yt = yt.reshape(rows_p, LANES)

    out = pl.pallas_call(
        functools.partial(_dice_kernel, num_classes=C),
        out_shape=jax.ShapeDtypeStruct((1, 1), jnp.float32),
        grid=(steps,),
        in_specs=[
            pl.BlockSpec((tile, LANES), lambda i: (i, 0)),
            pl.BlockSpec((tile, LANES), lambda i: (i, 0)),
        ],
        out_specs=pl.BlockSpec((1, 1), lambda i: (0, 0)),
        scratch_shapes=[
            pltpu.VMEM((1, LANES), jnp.float32),  # tp accumulator
            pltpu.VMEM((1, LANES), jnp.float32),  # sum_pred + sum_true accumulator
        ],
        compiler_params=pltpu.CompilerParams(
            dimension_semantics=("arbitrary",),
        ),
    )(yp, yt)
    return out[0, 0]


def _reference(y_pred, y_true):
    yt = y_true[:, 1:].astype(jnp.float32)
    yp = y_pred[:, 1:].astype(jnp.float32)
    tp = jnp.sum(yt * yp, axis=0)
    fp = jnp.sum(yp, axis=0) - tp
    fn = jnp.sum(yt, axis=0) - tp
    f1 = jnp.mean((tp + SMOOTHING) / (tp + 0.5 * (fn + fp) + SMOOTHING))
    return -f1


if __name__ == "__main__":
    key = jax.random.PRNGKey(0)
    k1, k2, k3, k4 = jax.random.split(key, 4)

    # Case 1: multi-step grid (rows=32, tile=8 -> 4 grid steps of accumulation).
    N1, C1 = 512, 8
    yp1 = jax.nn.sigmoid(jax.random.normal(k1, (N1, C1), dtype=jnp.float32))
    yt1 = (jax.random.uniform(k2, (N1, C1)) > 0.5).astype(jnp.float32)
    out1 = jax.block_until_ready(dice_loss_forward(yp1, yt1, tile_rows=8))
    ref1 = _reference(yp1, yt1)
    assert jnp.allclose(out1, ref1, atol=1e-5, rtol=1e-5), (out1, ref1)

    # Case 2: ragged flat length needing zero padding (N*C=400 -> padded to 512).
    N2, C2 = 100, 4
    yp2 = jax.nn.sigmoid(jax.random.normal(k3, (N2, C2), dtype=jnp.float32))
    yt2 = (jax.random.uniform(k4, (N2, C2)) > 0.5).astype(jnp.float32)
    out2 = jax.block_until_ready(dice_loss_forward(yp2, yt2))
    ref2 = _reference(yp2, yt2)
    assert jnp.allclose(out2, ref2, atol=1e-5, rtol=1e-5), (out2, ref2)

    print("KERNEL_OK")
</pallas_src>

<mosaic_0001>
module attributes {stable_mosaic.version = 11 : i64} {
  func.func @_dice_kernel(%arg0: i32, %arg1: memref<8x128xf32, #tpu.memory_space<vmem>>, %arg2: memref<8x128xf32, #tpu.memory_space<vmem>>, %arg3: memref<1x1xf32, #tpu.memory_space<vmem>>, %arg4: memref<1x128xf32, #tpu.memory_space<vmem>>, %arg5: memref<1x128xf32, #tpu.memory_space<vmem>>) attributes {dimension_semantics = [#tpu.dimension_semantics<arbitrary>], iteration_bounds = array<i64: 4>, scalar_prefetch = 0 : i64, scratch_operands = 2 : i64, tpu.core_type = #tpu.core_type<tc>, window_params = [{transform_indices = @transform_0, window_bounds = array<i64: 8, 128>}, {transform_indices = @transform_1, window_bounds = array<i64: 8, 128>}, {pipeline_mode = #tpu.pipeline_mode<synchronous>, transform_indices = @transform_2, window_bounds = array<i64: 1, 1>}]} {
    %c0_i32 = arith.constant 0 : i32
    %0 = arith.cmpi eq, %arg0, %c0_i32 : i32
    %1 = arith.extui %0 : i1 to i32
    %c0_i32_0 = arith.constant 0 : i32
    %2 = arith.cmpi ne, %1, %c0_i32_0 : i32
    scf.if %2 {
      %cst_14 = arith.constant 0.000000e+00 : f32
      %20 = vector.broadcast %cst_14 : f32 to vector<1x128xf32>
      %c0_15 = arith.constant 0 : index
      %c0_16 = arith.constant 0 : index
      %21 = vector.load %arg4[%c0_15, %c0_16] : memref<1x128xf32, #tpu.memory_space<vmem>>, vector<1x128xf32>
      tpu.vector_store %arg4[%c0_15, %c0_16], %20 {strides = array<i32>} : memref<1x128xf32, #tpu.memory_space<vmem>>, vector<1x128xf32>,
      %cst_17 = arith.constant 0.000000e+00 : f32
      %22 = vector.broadcast %cst_17 : f32 to vector<1x128xf32>
      %c0_18 = arith.constant 0 : index
      %c0_19 = arith.constant 0 : index
      %23 = vector.load %arg5[%c0_18, %c0_19] : memref<1x128xf32, #tpu.memory_space<vmem>>, vector<1x128xf32>
      tpu.vector_store %arg5[%c0_18, %c0_19], %22 {strides = array<i32>} : memref<1x128xf32, #tpu.memory_space<vmem>>, vector<1x128xf32>,
    } else {
    }
    %c0 = arith.constant 0 : index
    %c0_1 = arith.constant 0 : index
    %3 = vector.load %arg1[%c0, %c0_1] : memref<8x128xf32, #tpu.memory_space<vmem>>, vector<8x128xf32>
    %c0_2 = arith.constant 0 : index
    %c0_3 = arith.constant 0 : index
    %4 = vector.load %arg2[%c0_2, %c0_3] : memref<8x128xf32, #tpu.memory_space<vmem>>, vector<8x128xf32>
    %c0_4 = arith.constant 0 : index
    %c0_5 = arith.constant 0 : index
    %5 = vector.load %arg4[%c0_4, %c0_5] : memref<1x128xf32, #tpu.memory_space<vmem>>, vector<1x128xf32>
    %6 = arith.mulf %4, %3 : vector<8x128xf32>
    %cst = arith.constant dense<0.000000e+00> : vector<128xf32>
    %7 = vector.multi_reduction <add>, %6, %cst [0] : vector<8x128xf32> to vector<128xf32>
    %8 = vector.shape_cast %7 : vector<128xf32> to vector<1x128xf32>
    %9 = arith.addf %5, %8 : vector<1x128xf32>
    %c0_6 = arith.constant 0 : index
    %c0_7 = arith.constant 0 : index
    %10 = vector.load %arg4[%c0_6, %c0_7] : memref<1x128xf32, #tpu.memory_space<vmem>>, vector<1x128xf32>
    tpu.vector_store %arg4[%c0_6, %c0_7], %9 {strides = array<i32>} : memref<1x128xf32, #tpu.memory_space<vmem>>, vector<1x128xf32>,
    %c0_8 = arith.constant 0 : index
    %c0_9 = arith.constant 0 : index
    %11 = vector.load %arg5[%c0_8, %c0_9] : memref<1x128xf32, #tpu.memory_space<vmem>>, vector<1x128xf32>
    %12 = arith.addf %3, %4 : vector<8x128xf32>
    %cst_10 = arith.constant dense<0.000000e+00> : vector<128xf32>
    %13 = vector.multi_reduction <add>, %12, %cst_10 [0] : vector<8x128xf32> to vector<128xf32>
    %14 = vector.shape_cast %13 : vector<128xf32> to vector<1x128xf32>
    %15 = arith.addf %11, %14 : vector<1x128xf32>
    %c0_11 = arith.constant 0 : index
    %c0_12 = arith.constant 0 : index
    %16 = vector.load %arg5[%c0_11, %c0_12] : memref<1x128xf32, #tpu.memory_space<vmem>>, vector<1x128xf32>
    tpu.vector_store %arg5[%c0_11, %c0_12], %15 {strides = array<i32>} : memref<1x128xf32, #tpu.memory_space<vmem>>, vector<1x128xf32>,
    %c3_i32 = arith.constant 3 : i32
    %17 = arith.cmpi eq, %arg0, %c3_i32 : i32
    %18 = arith.extui %17 : i1 to i32
    %c0_i32_13 = arith.constant 0 : i32
    %19 = arith.cmpi ne, %18, %c0_i32_13 : i32
    scf.if %19 {
      %c0_14 = arith.constant 0 : index
      %c0_15 = arith.constant 0 : index
      %20 = vector.load %arg4[%c0_14, %c0_15] : memref<1x128xf32, #tpu.memory_space<vmem>>, vector<1x128xf32>
      %c0_16 = arith.constant 0 : index
      %c0_17 = arith.constant 0 : index
      %21 = vector.load %arg5[%c0_16, %c0_17] : memref<1x128xf32, #tpu.memory_space<vmem>>, vector<1x128xf32>
      %c64_i32 = arith.constant 64 : i32
      %22 = tpu.dynamic_rotate %20 by %c64_i32 dim 1 : vector<1x128xf32>, i32 -> vector<1x128xf32>
      %23 = arith.addf %20, %22 : vector<1x128xf32>
      %c64_i32_18 = arith.constant 64 : i32
      %24 = tpu.dynamic_rotate %21 by %c64_i32_18 dim 1 : vector<1x128xf32>, i32 -> vector<1x128xf32>
      %25 = arith.addf %21, %24 : vector<1x128xf32>
      %c32_i32 = arith.constant 32 : i32
      %26 = tpu.dynamic_rotate %23 by %c32_i32 dim 1 : vector<1x128xf32>, i32 -> vector<1x128xf32>
      %27 = arith.addf %23, %26 : vector<1x128xf32>
      %c32_i32_19 = arith.constant 32 : i32
      %28 = tpu.dynamic_rotate %25 by %c32_i32_19 dim 1 : vector<1x128xf32>, i32 -> vector<1x128xf32>
      %29 = arith.addf %25, %28 : vector<1x128xf32>
      %c16_i32 = arith.constant 16 : i32
      %30 = tpu.dynamic_rotate %27 by %c16_i32 dim 1 : vector<1x128xf32>, i32 -> vector<1x128xf32>
      %31 = arith.addf %27, %30 : vector<1x128xf32>
      %c16_i32_20 = arith.constant 16 : i32
      %32 = tpu.dynamic_rotate %29 by %c16_i32_20 dim 1 : vector<1x128xf32>, i32 -> vector<1x128xf32>
      %33 = arith.addf %29, %32 : vector<1x128xf32>
      %c8_i32 = arith.constant 8 : i32
      %34 = tpu.dynamic_rotate %31 by %c8_i32 dim 1 : vector<1x128xf32>, i32 -> vector<1x128xf32>
      %35 = arith.addf %31, %34 : vector<1x128xf32>
      %c8_i32_21 = arith.constant 8 : i32
      %36 = tpu.dynamic_rotate %33 by %c8_i32_21 dim 1 : vector<1x128xf32>, i32 -> vector<1x128xf32>
      %37 = arith.addf %33, %36 : vector<1x128xf32>
      %cst_22 = arith.constant 9.99999974E-6 : f32
      %38 = vector.broadcast %cst_22 : f32 to vector<1x128xf32>
      %39 = arith.addf %35, %38 : vector<1x128xf32>
      %cst_23 = arith.constant 5.000000e-01 : f32
      %40 = vector.broadcast %cst_23 : f32 to vector<1x128xf32>
      %41 = arith.mulf %40, %37 : vector<1x128xf32>
      %cst_24 = arith.constant 9.99999974E-6 : f32
      %42 = vector.broadcast %cst_24 : f32 to vector<1x128xf32>
      %43 = arith.addf %41, %42 : vector<1x128xf32>
      %44 = arith.divf %39, %43 : vector<1x128xf32>
      %45 = tpu.iota {dimensions = array<i32: 1>} : vector<1x128xi32>
      %c1_i32 = arith.constant 1 : i32
      %46 = vector.broadcast %c1_i32 : i32 to vector<1x128xi32>
      %47 = arith.cmpi sge, %45, %46 : vector<1x128xi32>
      %c8_i32_25 = arith.constant 8 : i32
      %48 = vector.broadcast %c8_i32_25 : i32 to vector<1x128xi32>
      %49 = arith.cmpi slt, %45, %48 : vector<1x128xi32>
      %50 = arith.andi %47, %49 : vector<1x128xi1>
      %cst_26 = arith.constant 0.000000e+00 : f32
      %51 = vector.broadcast %cst_26 : f32 to vector<1x128xf32>
      %52 = arith.select %50, %44, %51 : vector<1x128xi1>, vector<1x128xf32>
      %cst_27 = arith.constant dense<0.000000e+00> : vector<1xf32>
      %53 = vector.multi_reduction <add>, %52, %cst_27 [1] : vector<1x128xf32> to vector<1xf32>
      %54 = vector.shape_cast %53 : vector<1xf32> to vector<1x1xf32>
      %cst_28 = arith.constant 0.142857149 : f32
      %55 = vector.broadcast %cst_28 : f32 to vector<1x1xf32>
      %56 = arith.mulf %54, %55 : vector<1x1xf32>
      %cst_29 = arith.constant 0.000000e+00 : f32
      %57 = vector.broadcast %cst_29 : f32 to vector<1x1xf32>
      %58 = arith.subf %57, %56 : vector<1x1xf32>
      %c0_30 = arith.constant 0 : index
      %c0_31 = arith.constant 0 : index
      %59 = vector.load %arg3[%c0_30, %c0_31] : memref<1x1xf32, #tpu.memory_space<vmem>>, vector<1x1xf32>
      tpu.vector_store %arg3[%c0_30, %c0_31], %58 {strides = array<i32>} : memref<1x1xf32, #tpu.memory_space<vmem>>, vector<1x1xf32>,
    } else {
    }
    return
  }
  func.func @transform_0(%arg0: i32) -> (i32, i32) {
    %c0_i32 = arith.constant 0 : i32
    %c0_i32_0 = arith.constant 0 : i32
    return %arg0, %c0_i32 : i32, i32
  }
  func.func @transform_1(%arg0: i32) -> (i32, i32) {
    %c0_i32 = arith.constant 0 : i32
    %c0_i32_0 = arith.constant 0 : i32
    return %arg0, %c0_i32 : i32, i32
  }
  func.func @transform_2(%arg0: i32) -> (i32, i32) {
    %c0_i32 = arith.constant 0 : i32
    %c0_i32_0 = arith.constant 0 : i32
    %c0_i32_1 = arith.constant 0 : i32
    return %c0_i32, %c0_i32_0 : i32, i32
  }
}

</mosaic_0001>

<bundles_post_ra>
// kernel: tpu_custom_call.1
= control target key start
LH: loop header
LB: loop body
LE: loop exit
PB: predicated region body
PF: predicated region fallthrough
CT: control target
= control target key end

     0   :  { %7 = vsyncpa [#allocation5], 0  ;;  %s742_s0 = inlined_call_operand.hbm [shape: f32[32,128], index: 0, kind: input, shape index: {}]   ;;  %s743_s1 = inlined_call_operand.hbm [shape: f32[32,128], index: 1, kind: input, shape index: {}]   ;;  %s744_s2 = inlined_call_operand.hbm [shape: f32[1,1], index: 2, kind: output, shape index: {}]  }
   0x1   :  { %9 = vsyncpa [#allocation5 + $0x1], 0 }
   0x2   :  { %10 = vsyncpa [#allocation8], 0 }
   0x3   :  { %12 = vsyncpa [#allocation8 + $0x1], 0 }
   0x4   :  { %13 = vsyncpa [#allocation6], 0  ;;  %s568_s9 = smov 0   ;;  %s570_s10 = smov 0  }
   0x5   :  { %s572_s11 = smov 0   ;;  %s574_s12 = smov 0  }
   0x6 LB: > { %s587_s13 = sadd.s32 4294967295, %s543_s12   ;;  %s590_s14 = sadd.s32 1, %s543_s12   ;;  %s543_s12 = sphi %s574_s12, %s756_s12   ;;  %s539_s11 = sphi %s572_s11, %s755_s11   ;;  %s535_s10 = sphi %s570_s10, %s754_s10   ;;  %s531_s9 = sphi %s568_s9, %s753_s9  }
   0x7   : > { %s23_s15 = ssub.s32 %s543_s12, %s590_s14  ;;  %s26_s16 = sadd.s32 1, %s539_s11 }
   0x8   : > { %p24_p0 = scmp.eq.s32.totalorder %s23_s15, 0  ;;  %p33_p1 = scmp.ne.s32.totalorder %s539_s11, %s535_s10 }
   0x9   : > { %p34_p2 = scmp.eq.s32.totalorder %s543_s12, 0  ;;  %p39_p3 = scmp.ne.s32.totalorder %s535_s10, %s531_s9 }
   0xa   : > { %s600_s17 = scalar_select %p24_p0, %s539_s11, %s26_s16  }
   0xb   : > { %p35_p4 = por %p34_p2, %p33_p1  ;;  %p40_p5 = scmp.eq.s32.totalorder %s587_s13, 0 }
   0xc   : > { %p372_p6 = scmp.lt.s32.totalorder %s543_s12, 4  ;;  %s609_s19 = sand.u32 1, %s539_s11  }
   0xd   : > { %p604_p7 = por %p40_p5, %p39_p3  ;;  %s344_s20 = sshll.u32 %s609_s19, 3 }
   0xe   : > { %s345_s21 = sshll.u32 %s543_s12, 7  ;;  %s114_s25 = scalar_lea.vmem [#allocation4], %s344_s20 }
   0xf   : > { %s746_s18 = scalar_select %p604_p7, 1, 0 }
  0x10   : > { %s618_s24 = scalar_lea.hbm %s742_s0, %s345_s21  ;;  %s121_s26 = sshll.u32 %s114_s25, 4  ;;  %s622_s26 = int_to_ptr.vmem [resolvable:$true] %s121_s26 }
  0x11   : > { %p624_p8 = pnand %p372_p6, %p35_p4  ;;  %s111_s28 = scalar_lea.sflag [#allocation5], %s609_s19 }
  0x12   : > { %s415_s29 = scalar_lea.hbm %s618_s24, 128  ;;  %s420_s4 = scalar_lea.hbm %s742_s0, 512 }
  0x13   : > { %p416_p11 = scmp.ne.s32.totalorder %s618_s24, %s415_s29  ;;  %p417_p12 = pneg %p624_p8 }
  0x14   : > { %p421_p1 = scmp.lt.u32.totalorder %s618_s24, %s742_s0  ;;  %p422_p2 = scmp.lt.u32.totalorder %s420_s4, %s415_s29 }
  0x15   : > { %p418_p13 = pnand %p417_p12, %p416_p11  ;;  %p424_p4 = scmp.lt.u32.totalorder %s415_s29, %s618_s24 }
  0x16   : > { %p423_p3 = por %p422_p2, %p421_p1 }
  0x17   : > { %p419_p0 = pneg %p418_p13 }
  0x18   : > { %p425_p5 = por %p424_p4, %p423_p3 }
  0x1a   : > { %p426_p6 = pnand %p425_p5, %p419_p0 }
  0x1c   : > { %429 = shalt.err (!%p426_p6)
}
  0x1d   : > { %s430_s7 = scalar_lea.vmem %s622_s26, 128  ;;  %s545_s8 = smov [#allocation4]  }
  0x1e   : > { %p431_p11 = scmp.ne.s32.totalorder %s622_s26, %s430_s7  ;;  %s435_s9 = sshll.u32 %s545_s8, 4  ;;  %s436_s9 = int_to_ptr.vmem [resolvable:$false] %s435_s9 }
  0x1f   : > { %s437_s15 = scalar_lea.vmem %s436_s9, 256  ;;  %p438_p10 = scmp.lt.s32.totalorder %s622_s26, %s436_s9 }
  0x20   : > { %p433_p13 = pnand %p431_p11, %p417_p12  ;;  %p439_p1 = scmp.lt.s32.totalorder %s437_s15, %s430_s7 }
  0x22   : > { %p434_p9 = pneg %p433_p13  ;;  %p440_p2 = por %p439_p1, %p438_p10 }
  0x24   : > { %p441_p3 = pnand %p440_p2, %p434_p9 }
  0x26   : > { %444 = shalt.err (!%p441_p3)
}
  0x27   : > { %368 = dma.hbm_to_vmem [thread:$0]  (!%p624_p8), %s618_s24, 128, %s622_s26, %s111_s28  }
  0x28   : > { %p748_p0 = scmp.lt.s32.totalorder %s543_s12, 5  ;;  %p749_p4 = scmp.ge.s32.totalorder %s543_s12, 1 }
  0x29   : > { %s669_s25 = scalar_lea.hbm %s743_s1, %s345_s21  ;;  %s132_s29 = scalar_lea.vmem [#allocation7], %s344_s20 }
  0x2a   : > { %p660_p5 = pnand %p749_p4, %p748_p0  ;;  %s139_s30 = sshll.u32 %s132_s29, 4  ;;  %s140_s30 = int_to_ptr.vmem [resolvable:$true] %s139_s30 }
  0x2b   : > { %s129_s24 = scalar_lea.sflag [#allocation8], %s609_s19  ;;  %s445_s26 = scalar_lea.hbm %s669_s25, 128 }
  0x2c   : > { %s750_s16 = scalar_select %p660_p5, 1, 0 }
  0x2d   : > { %p446_p9 = scmp.ne.s32.totalorder %s669_s25, %s445_s26  ;;  %s450_s21 = scalar_lea.hbm %s743_s1, 512 }
  0x2e   : > { %p451_p11 = scmp.lt.u32.totalorder %s669_s25, %s743_s1  ;;  %p452_p13 = scmp.lt.u32.totalorder %s450_s21, %s445_s26 }
  0x2f   : > { %p448_p10 = pnand %p446_p9, %p417_p12  ;;  %p454_p2 = scmp.lt.u32.totalorder %s445_s26, %s669_s25 }
  0x30   : > { %p453_p1 = por %p452_p13, %p451_p11 }
  0x31   : > { %p449_p6 = pneg %p448_p10 }
  0x32   : > { %p455_p3 = por %p454_p2, %p453_p1 }
  0x34   : > { %p456_p0 = pnand %p455_p3, %p449_p6 }
  0x36   : > { %459 = shalt.err (!%p456_p0)
}
  0x37   : > { %s460_s19 = scalar_lea.vmem %s140_s30, 128  ;;  %s546_s20 = smov [#allocation7]  }
  0x38   : > { %p461_p4 = scmp.ne.s32.totalorder %s140_s30, %s460_s19  ;;  %s465_s5 = sshll.u32 %s546_s20, 4  ;;  %s466_s5 = int_to_ptr.vmem [resolvable:$false] %s465_s5 }
  0x39   : > { %s467_s6 = scalar_lea.vmem %s466_s5, 256  ;;  %p468_p7 = scmp.lt.s32.totalorder %s140_s30, %s466_s5 }
  0x3a   : > { %p463_p9 = pnand %p461_p4, %p417_p12  ;;  %p469_p5 = scmp.lt.s32.totalorder %s467_s6, %s460_s19 }
  0x3c   : > { %p464_p10 = pneg %p463_p9  ;;  %p470_p11 = por %p469_p5, %p468_p7 }
  0x3e   : > { %p471_p13 = pnand %p470_p11, %p464_p10 }
  0x40   : > { %474 = shalt.err (!%p471_p13)
}
  0x41   : > { %371 = dma.hbm_to_vmem [thread:$0]  (!%p624_p8), %s669_s25, 128, %s140_s30, %s129_s24  }
  0x42   : > { %p751_p6 = scmp.ne.s32.totalorder %s750_s16, 0 }
  0x43   : > { %s150_s7 = sand.u32 (!%p751_p6), 1, %s535_s10   ;;  %p752_p12 = scmp.ne.s32.totalorder (!%p751_p6), %s746_s18, 0 }
  0x44   : > { %148 = sbr.rel (%p751_p6) target bundleno = 771 (0x303), region = 28  ;;  %s349_s8 = sshll.u32 (!%p751_p6), %s150_s7, 3 }
  0x45   : > { %s151_s9 = scalar_lea.sflag (!%p751_p6), [#allocation5], %s150_s7  ;;  %s154_s15 = scalar_lea.vmem (!%p751_p6), [#allocation4], %s349_s8 }
  0x4b   : > { %518 = dma.done.wait (%p752_p12), %s151_s9, 128  }
  0x4c   : > { %520 = vsyncadd (%p752_p12), %s151_s9, 4294967168  ;;  %s160_s22 = scalar_lea.sflag [#allocation8], %s150_s7  ;;  %s163_s23 = scalar_lea.vmem [#allocation7], %s349_s8 }
  0x4d   : > { %522 = dma.done.wait (%p752_p12), %s160_s22, 128  }
  0x4e   : > { %524 = vsyncadd (%p752_p12), %s160_s22, 4294967168  ;;  %p351_p7 = scmp.ne.s32.totalorder %s587_s13, 0 }
  0x4f   : > { %v547_v0 = vmov (!%p351_p7), 0.0  }
  0x50   : > { %187 = sbr.rel (%p351_p7) target bundleno = 87 (0x57), region = 40  ;;  %188 = vst [vmem:[#allocation2] sm:$0x1] (!%p351_p7), %v547_v0  ;;  %189 = vst [vmem:[#allocation3] sm:$0x1] (!%p351_p7), %v547_v0 }
  0x57 PF: > { %v190_v1 = vld [vmem:[%s154_s15] sm:$0xff]  ;;  %v191_v2 = vld [vmem:[%s163_s23] sm:$0xff]  ;;  %p352_p8 = scmp.ne.s32.totalorder %s587_s13, 3 }
  0x58   : > { %v193_v3 = vmul.f32 %v191_v2, %v190_v1  ;;  %v203_v4 = vadd.f32 %v191_v2, %v190_v1  ;;  %v192_v15 = vld [vmem:[#allocation2] sm:$0x1]  ;;  %v202_v16 = vld [vmem:[#allocation3] sm:$0x1]  ;;  %s548_s18 = smov (!%p352_p8), 64   ;;  %s549_s27 = smov (!%p352_p8), 32   ;;  %v247_v39 = vlaneseq (!%p352_p8) }
  0x59   : > { %s550_s16 = smov (!%p352_p8), 16   ;;  %s551_s25 = smov (!%p352_p8), 8   ;;  %vm253_vm3 = vcmask (!%p352_p8), 1040384   ;;  %vm259_vm4 = vcmask (!%p352_p8), 0  }
  0x5a   : > { %v194_v5 = vrot.slane %v193_v3, 4  ;;  %v204_v6 = vrot.slane %v203_v4, 4  ;;  %v248_v41 = vand.u32 (!%p352_p8), 127, %v247_v39 }
  0x5c   : > { %v195_v7 = vadd.f32 %v194_v5, %v193_v3  ;;  %v205_v8 = vadd.f32 %v204_v6, %v203_v4  ;;  %vm249_vm0 = vcmp.ge.s32.totalorder (!%p352_p8), %v248_v41, 1  ;;  %vm250_vm1 = vcmp.lt.s32.totalorder (!%p352_p8), %v248_v41, 8 }
  0x5d   : > { %vm251_vm2 = vmand (!%p352_p8), %vm249_vm0, %vm250_vm1 }
  0x5e   : > { %v196_v9 = vrot.slane %v195_v7, 2  ;;  %v206_v10 = vrot.slane %v205_v8, 2 }
  0x60   : > { %v197_v11 = vadd.f32 %v196_v9, %v195_v7  ;;  %v207_v12 = vadd.f32 %v206_v10, %v205_v8 }
  0x62   : > { %v198_v13 = vrot.slane %v197_v11, 1  ;;  %v208_v14 = vrot.slane %v207_v12, 1  ;;  %215 = sbr.rel (%p352_p8) target bundleno = 746 (0x2ea), region = 44 }
  0x64   : > { %v199_v17 = vadd.f32 %v198_v13, %v197_v11  ;;  %v209_v18 = vadd.f32 %v208_v14, %v207_v12 }
  0x66   : > { %v200_v19 = vadd.f32 %v199_v17, %v192_v15  ;;  %v210_v20 = vadd.f32 %v209_v18, %v202_v16 }
  0x68   : > { %201 = vst [vmem:[#allocation2] sm:$0x1] %v200_v19  ;;  %211 = vst [vmem:[#allocation3] sm:$0x1] %v210_v20 }
  0x6f   : > { %v217_v21 = vld [vmem:[#allocation3] sm:$0x1]  ;;  %v216_v22 = vld [vmem:[#allocation2] sm:$0x1] }
  0x70   : > { %221 = vrot.lane.b32.xlu0 %v217_v21, %s548_s18 }
  0x74   : > { %218 = vrot.lane.b32.xlu0 %v216_v22, %s548_s18 }
  0xe2   : > { %v222_v23 = vpop.permute.xlu0 %221 }
  0xe3   : > { %v223_v24 = vadd.f32 %v222_v23, %v217_v21 }
  0xe5   : > { %227 = vrot.lane.b32.xlu1 %v223_v24, %s549_s27 }
  0xe6   : > { %v219_v25 = vpop.permute.xlu0 %218 }
  0xe7   : > { %v220_v26 = vadd.f32 %v219_v25, %v216_v22 }
  0xe9   : > { %224 = vrot.lane.b32.xlu1 %v220_v26, %s549_s27 }
 0x157   : > { %v228_v27 = vpop.permute.xlu1 %227 }
 0x158   : > { %v229_v28 = vadd.f32 %v228_v27, %v223_v24 }
 0x15a   : > { %233 = vrot.lane.b32.xlu0 %v229_v28, %s550_s16 }
 0x15b   : > { %v225_v29 = vpop.permute.xlu1 %224 }
 0x15c   : > { %v226_v30 = vadd.f32 %v225_v29, %v220_v26 }
 0x15e   : > { %230 = vrot.lane.b32.xlu1 %v226_v30, %s550_s16 }
 0x1cc   : > { %v234_v31 = vpop.permute.xlu0 %233 }
 0x1cd   : > { %v235_v32 = vadd.f32 %v234_v31, %v229_v28 }
 0x1cf   : > { %239 = vrot.lane.b32.xlu0 %v235_v32, %s551_s25 }
 0x1d0   : > { %v231_v33 = vpop.permute.xlu1 %230 }
 0x1d1   : > { %v232_v34 = vadd.f32 %v231_v33, %v226_v30 }
 0x1d3   : > { %236 = vrot.lane.b32.xlu1 %v232_v34, %s551_s25 }
 0x241   : > { %v240_v35 = vpop.permute.xlu0 %239 }
 0x242   : > { %v241_v36 = vadd.f32 %v240_v35, %v235_v32 }
 0x244   : > { %v243_v37 = vmul.f32 0.5, %v241_v36 }
 0x245   : > { %v237_v40 = vpop.permute.xlu1 %236 }
 0x246   : > { %v244_v38 = vadd.f32 1e-05, %v243_v37  ;;  %v238_v42 = vadd.f32 %v237_v40, %v232_v34 }
 0x248   : > { %413 = vrcp.f32 %v244_v38  ;;  %v242_v43 = vadd.f32 1e-05, %v238_v42 }
 0x252   : > { %v414_v44 = vpop.eup %413 }
 0x253   : > { %v246_v45 = vmul.f32 %v414_v44, %v242_v43 }
 0x255   : > { %v252_v46 = vsel %vm251_vm2, %v246_v45, 0.0 }
 0x256   : > { %v254_v47 = vsel %vm253_vm3, %v252_v46, 0.0 }
 0x257   : > { %255 = vadd.xlane.f32.xlu0 %v254_v47 }
 0x2e4   : > { %v256_v48 = vpop.xlane.xlu0 %255 }
 0x2e5   : > { %v257_v49 = vmul.f32 0.14285715, %v256_v48 }
 0x2e7   : > { %v258_v50 = vsub.f32 0.0, %v257_v49 }
 0x2e9   : > { %260 = vst.msk [vmem:[#allocation9] sm:$0x1] %vm259_vm4, %v258_v50 }
 0x2ea PF: > { %p373_p5 = scmp.eq.s32.totalorder %s587_s13, 3  ;;  %s552_s29 = smov [#allocation9]  }
 0x2eb   : > { %s268_s30 = sshll.u32 %s552_s29, 4  ;;  %s269_s30 = int_to_ptr.vmem [resolvable:$true] %s268_s30 }
 0x2ec   : > { %s475_s24 = scalar_lea.vmem %s269_s30, 16  ;;  %s481_s26 = scalar_lea.vmem %s269_s30, 32 }
 0x2ed   : > { %p476_p1 = scmp.ne.s32.totalorder %s269_s30, %s475_s24  ;;  %p482_p0 = scmp.lt.s32.totalorder %s269_s30, %s269_s30 }
 0x2ee   : > { %p483_p4 = scmp.lt.s32.totalorder %s481_s26, %s475_s24 }
 0x2ef   : > { %p477_p2 = pnand %p476_p1, %p373_p5 }
 0x2f0   : > { %p484_p9 = por %p483_p4, %p482_p0 }
 0x2f1   : > { %p478_p3 = pneg %p477_p2 }
 0x2f3   : > { %p485_p10 = pnand %p484_p9, %p478_p3 }
 0x2f5   : > { %488 = shalt.err (!%p485_p10)
}
 0x2f6   : > { %s489_s21 = scalar_lea.hbm %s744_s2, 16 }
 0x2f7   : > { %p490_p11 = scmp.ne.s32.totalorder %s744_s2, %s489_s21  ;;  %p495_p12 = scmp.lt.u32.totalorder %s489_s21, %s744_s2 }
 0x2f9   : > { %p491_p13 = pnand %p490_p11, %p373_p5 }
 0x2fb   : > { %p492_p6 = pneg %p491_p13 }
 0x2fd   : > { %p497_p7 = pnand %p495_p12, %p492_p6 }
 0x2ff   : > { %500 = shalt.err (!%p497_p7)
}
 0x300   : > { %362 = dma.vmem_to_hbm [thread:$0]  (%p373_p5), %s269_s30, 16, %s744_s2, [#allocation6]  }
 0x301   : > { %526 = dma.done.wait (%p373_p5), [#allocation6], 16  }
 0x302   : > { %528 = vsyncadd (%p373_p5), [#allocation6], 4294967280 }
 0x303 PF: > { %p16_p8 = scmp.ge.s32.totalorder %s590_s14, 6   ;;  %s753_s9 = smov %s535_s10 }
 0x304   : > { %s754_s10 = smov %s539_s11  ;;  %s755_s11 = smov %s600_s17 }
 0x305   : > { %s756_s12 = smov %s590_s14  ;;  %18 = sbr.rel (!%p16_p8) target bundleno = 6 (0x6), region = 86 }
 0x30c   :  { %281 = vsyncpa [#allocation5], 1 }
 0x30d   :  { %283 = vsyncpa [#allocation5 + $0x1], 1 }
 0x30e   :  { %284 = vsyncpa [#allocation8], 1 }
 0x30f   :  { %286 = vsyncpa [#allocation8 + $0x1], 1 }
 0x310   :  { %287 = vsyncpa [#allocation6], 1 }
 0x311   :  { %289 = vsyncpa [#allocation6 + $0x1], 1 }

</bundles_post_ra>
